<compile_context>
chip_gen: v7x
topology: tpu7x:2x2x1
jax: 0.10.0
libtpu: 0.0.40
codegen_flags: <defaults>
</compile_context>

<pallas_src>
import jax
import jax.numpy as jnp
from jax.experimental import pallas as pl
from jax.experimental.pallas import tpu as pltpu


def _round_up(v, m):
    return (v + m - 1) // m * m


def _mlp_kernel(x_ref, w1_ref, b1_ref, w2_ref, b2_ref, w3_ref, b3_ref, o_ref):
    x = x_ref[...].astype(jnp.bfloat16)
    # fc1 (bf16 x bf16 -> f32 acc) + bias + relu (f32)
    h1 = jnp.dot(x, w1_ref[...], preferred_element_type=jnp.float32)
    h1 = jnp.maximum(h1 + b1_ref[...], 0.0)
    # dropout1 -> identity (eval)
    # fc2
    h2 = jnp.dot(h1.astype(jnp.bfloat16), w2_ref[...],
                 preferred_element_type=jnp.float32)
    h2 = jnp.maximum(h2 + b2_ref[...], 0.0)
    # dropout2 -> identity (eval)
    # fc3 (output lanes padded to 128 -> unmasked lane-dense store)
    out = jnp.dot(h2.astype(jnp.bfloat16), w3_ref[...],
                  preferred_element_type=jnp.float32)
    o_ref[...] = (out + b3_ref[...]).astype(o_ref.dtype)


def prepare_dist_est_params(w1, b1, w2, b2, w3, b3):
    """One-time (model-init) prep.

    PyTorch layout in:  w*: (out_features, in_features), b*: (out_features,).
    Out: weights transposed to (in, out); hidden dim zero-padded to a multiple of
    128; num_classes zero-padded to 128 (lane-dense output store); weights cast
    to bf16; biases kept f32 as (1, out) rows.  Zero padding is exact through
    bias + relu because padded lanes stay 0.
    """
    hidden = w1.shape[0]
    num_classes = w3.shape[0]
    hp = _round_up(hidden, 128)
    cp = _round_up(num_classes, 128)
    pad_h = hp - hidden
    pad_c = cp - num_classes

    w1_t = jnp.pad(w1.T, ((0, 0), (0, pad_h))).astype(jnp.bfloat16)      # (in,  HP)
    w2_t = jnp.pad(w2.T, ((0, pad_h), (0, pad_h))).astype(jnp.bfloat16)  # (HP,  HP)
    w3_t = jnp.pad(w3.T, ((0, pad_h), (0, pad_c))).astype(jnp.bfloat16)  # (HP,  CP)
    b1_2d = jnp.pad(b1.reshape(1, -1), ((0, 0), (0, pad_h))).astype(jnp.float32)
    b2_2d = jnp.pad(b2.reshape(1, -1), ((0, 0), (0, pad_h))).astype(jnp.float32)
    b3_2d = jnp.pad(b3.reshape(1, -1), ((0, 0), (0, pad_c))).astype(jnp.float32)
    return (w1_t, b1_2d, w2_t, b2_2d, w3_t, b3_2d, num_classes)


def dist_est_forward(x, params):
    """x: (B, input_size) f32; params: output of prepare_dist_est_params."""
    w1_t, b1, w2_t, b2, w3_t, b3, num_classes = params
    B, in_features = x.shape
    cp = w3_t.shape[1]

    # Batch tiling: rows must come in multiples of 8; cap the block so very large
    # batches get a multi-step parallel grid (megacore-shardable).
    BP = _round_up(B, 8)
    block_b = min(BP, 512)
    BP = _round_up(BP, block_b)

    xp = x if BP == B else jnp.pad(x, ((0, BP - B), (0, 0)))

    full2d = lambda a: pl.BlockSpec(a.shape, lambda i: (0, 0))  # VMEM-resident

    out = pl.pallas_call(
        _mlp_kernel,
        out_shape=jax.ShapeDtypeStruct((BP, cp), jnp.float32),
        grid=(BP // block_b,),
        in_specs=[
            pl.BlockSpec((block_b, in_features), lambda i: (i, 0)),
            full2d(w1_t), full2d(b1),
            full2d(w2_t), full2d(b2),
            full2d(w3_t), full2d(b3),
        ],
        out_specs=pl.BlockSpec((block_b, cp), lambda i: (i, 0)),
        compiler_params=pltpu.CompilerParams(dimension_semantics=("parallel",)),
    )(xp, w1_t, b1, w2_t, b2, w3_t, b3)

    return out[:B, :num_classes]


def _init_linear(key, out_features, in_features):
    # Deterministic synthetic init (matches PyTorch Linear shapes, not its RNG).
    kw, kb = jax.random.split(key)
    bound = 1.0 / jnp.sqrt(in_features)
    w = jax.random.uniform(kw, (out_features, in_features), jnp.float32, -bound, bound)
    b = jax.random.uniform(kb, (out_features,), jnp.float32, -bound, bound)
    return w, b


def _ref_bf16(x, w1, b1, w2, b2, w3, b3):
    # Plain-JAX reference mimicking the kernel's bf16-matmul / f32-accum path.
    f = lambda a: a.astype(jnp.bfloat16)
    h1 = jnp.maximum(jnp.dot(f(x), f(w1.T), preferred_element_type=jnp.float32) + b1, 0.0)
    h2 = jnp.maximum(jnp.dot(f(h1), f(w2.T), preferred_element_type=jnp.float32) + b2, 0.0)
    return jnp.dot(f(h2), f(w3.T), preferred_element_type=jnp.float32) + b3


if __name__ == "__main__":
    input_size, hidden_size, num_classes = 25, 350, 3
    batch = 8

    key = jax.random.PRNGKey(0)
    kx, k1, k2, k3 = jax.random.split(key, 4)

    x = jax.random.normal(kx, (batch, input_size), jnp.float32)
    w1, b1 = _init_linear(k1, hidden_size, input_size)
    w2, b2 = _init_linear(k2, hidden_size, hidden_size)
    w3, b3 = _init_linear(k3, num_classes, hidden_size)

    # One-time weight prep (transpose + pad + bf16), then forward.
    params = prepare_dist_est_params(w1, b1, w2, b2, w3, b3)
    out = dist_est_forward(x, params)
    jax.block_until_ready(out)

    ref = _ref_bf16(x, w1, b1, w2, b2, w3, b3)
    assert out.shape == (batch, num_classes)
    assert jnp.allclose(out, ref, atol=2e-2, rtol=2e-2)

    print("KERNEL_OK")
</pallas_src>

<mosaic_0001>
module attributes {stable_mosaic.version = 11 : i64} {
  func.func @_mlp_kernel(%arg0: i32, %arg1: memref<8x25xf32, #tpu.memory_space<vmem>>, %arg2: memref<25x384xbf16, #tpu.memory_space<vmem>>, %arg3: memref<1x384xf32, #tpu.memory_space<vmem>>, %arg4: memref<384x384xbf16, #tpu.memory_space<vmem>>, %arg5: memref<1x384xf32, #tpu.memory_space<vmem>>, %arg6: memref<384x128xbf16, #tpu.memory_space<vmem>>, %arg7: memref<1x128xf32, #tpu.memory_space<vmem>>, %arg8: memref<8x128xf32, #tpu.memory_space<vmem>>) attributes {dimension_semantics = [#tpu.dimension_semantics<parallel>], iteration_bounds = array<i64: 1>, scalar_prefetch = 0 : i64, scratch_operands = 0 : i64, tpu.core_type = #tpu.core_type<tc>, window_params = [{transform_indices = @transform_0, window_bounds = array<i64: 8, 25>}, {pipeline_mode = #tpu.pipeline_mode<synchronous>, transform_indices = @transform_1, window_bounds = array<i64: 25, 384>}, {pipeline_mode = #tpu.pipeline_mode<synchronous>, transform_indices = @transform_2, window_bounds = array<i64: 1, 384>}, {pipeline_mode = #tpu.pipeline_mode<synchronous>, transform_indices = @transform_3, window_bounds = array<i64: 384, 384>}, {pipeline_mode = #tpu.pipeline_mode<synchronous>, transform_indices = @transform_4, window_bounds = array<i64: 1, 384>}, {pipeline_mode = #tpu.pipeline_mode<synchronous>, transform_indices = @transform_5, window_bounds = array<i64: 384, 128>}, {pipeline_mode = #tpu.pipeline_mode<synchronous>, transform_indices = @transform_6, window_bounds = array<i64: 1, 128>}, {transform_indices = @transform_7, window_bounds = array<i64: 8, 128>}]} {
    %c0 = arith.constant 0 : index
    %c0_0 = arith.constant 0 : index
    %0 = vector.load %arg1[%c0, %c0_0] : memref<8x25xf32, #tpu.memory_space<vmem>>, vector<8x25xf32>
    %1 = arith.truncf %0 : vector<8x25xf32> to vector<8x25xbf16>
    %c0_1 = arith.constant 0 : index
    %c0_2 = arith.constant 0 : index
    %2 = vector.load %arg2[%c0_1, %c0_2] : memref<25x384xbf16, #tpu.memory_space<vmem>>, vector<25x384xbf16>
    %cst = arith.constant dense<0.000000e+00> : vector<8x384xf32>
    %3 = tpu.matmul %1, %2, %cst {dimension_numbers = #tpu.dot_dimension_numbers<[1], [0], [0], [1], [0, 0, 1, 1], [], []>} : vector<8x25xbf16>, vector<25x384xbf16>, vector<8x384xf32> -> vector<8x384xf32>
    %c0_3 = arith.constant 0 : index
    %c0_4 = arith.constant 0 : index
    %4 = vector.load %arg3[%c0_3, %c0_4] : memref<1x384xf32, #tpu.memory_space<vmem>>, vector<1x384xf32>
    %5 = vector.broadcast %4 : vector<1x384xf32> to vector<8x384xf32>
    %6 = arith.addf %3, %5 : vector<8x384xf32>
    %cst_5 = arith.constant 0.000000e+00 : f32
    %7 = vector.broadcast %cst_5 : f32 to vector<8x384xf32>
    %8 = arith.maximumf %6, %7 : vector<8x384xf32>
    %9 = arith.truncf %8 : vector<8x384xf32> to vector<8x384xbf16>
    %c0_6 = arith.constant 0 : index
    %c0_7 = arith.constant 0 : index
    %10 = vector.load %arg4[%c0_6, %c0_7] : memref<384x384xbf16, #tpu.memory_space<vmem>>, vector<384x384xbf16>
    %cst_8 = arith.constant dense<0.000000e+00> : vector<8x384xf32>
    %11 = tpu.matmul %9, %10, %cst_8 {dimension_numbers = #tpu.dot_dimension_numbers<[1], [0], [0], [1], [0, 0, 1, 1], [], []>} : vector<8x384xbf16>, vector<384x384xbf16>, vector<8x384xf32> -> vector<8x384xf32>
    %c0_9 = arith.constant 0 : index
    %c0_10 = arith.constant 0 : index
    %12 = vector.load %arg5[%c0_9, %c0_10] : memref<1x384xf32, #tpu.memory_space<vmem>>, vector<1x384xf32>
    %13 = vector.broadcast %12 : vector<1x384xf32> to vector<8x384xf32>
    %14 = arith.addf %11, %13 : vector<8x384xf32>
    %cst_11 = arith.constant 0.000000e+00 : f32
    %15 = vector.broadcast %cst_11 : f32 to vector<8x384xf32>
    %16 = arith.maximumf %14, %15 : vector<8x384xf32>
    %17 = arith.truncf %16 : vector<8x384xf32> to vector<8x384xbf16>
    %c0_12 = arith.constant 0 : index
    %c0_13 = arith.constant 0 : index
    %18 = vector.load %arg6[%c0_12, %c0_13] : memref<384x128xbf16, #tpu.memory_space<vmem>>, vector<384x128xbf16>
    %cst_14 = arith.constant dense<0.000000e+00> : vector<8x128xf32>
    %19 = tpu.matmul %17, %18, %cst_14 {dimension_numbers = #tpu.dot_dimension_numbers<[1], [0], [0], [1], [0, 0, 1, 1], [], []>} : vector<8x384xbf16>, vector<384x128xbf16>, vector<8x128xf32> -> vector<8x128xf32>
    %c0_15 = arith.constant 0 : index
    %c0_16 = arith.constant 0 : index
    %20 = vector.load %arg7[%c0_15, %c0_16] : memref<1x128xf32, #tpu.memory_space<vmem>>, vector<1x128xf32>
    %21 = vector.broadcast %20 : vector<1x128xf32> to vector<8x128xf32>
    %22 = arith.addf %19, %21 : vector<8x128xf32>
    %c0_17 = arith.constant 0 : index
    %c0_18 = arith.constant 0 : index
    %23 = vector.load %arg8[%c0_17, %c0_18] : memref<8x128xf32, #tpu.memory_space<vmem>>, vector<8x128xf32>
    tpu.vector_store %arg8[%c0_17, %c0_18], %22 {strides = array<i32>} : memref<8x128xf32, #tpu.memory_space<vmem>>, vector<8x128xf32>,
    return
  }
  func.func @transform_0(%arg0: i32) -> (i32, i32) {
    %c0_i32 = arith.constant 0 : i32
    %c0_i32_0 = arith.constant 0 : i32
    return %arg0, %c0_i32 : i32, i32
  }
  func.func @transform_1(%arg0: i32) -> (i32, i32) {
    %c0_i32 = arith.constant 0 : i32
    %c0_i32_0 = arith.constant 0 : i32
    %c0_i32_1 = arith.constant 0 : i32
    return %c0_i32, %c0_i32_0 : i32, i32
  }
  func.func @transform_2(%arg0: i32) -> (i32, i32) {
    %c0_i32 = arith.constant 0 : i32
    %c0_i32_0 = arith.constant 0 : i32
    %c0_i32_1 = arith.constant 0 : i32
    return %c0_i32, %c0_i32_0 : i32, i32
  }
  func.func @transform_3(%arg0: i32) -> (i32, i32) {
    %c0_i32 = arith.constant 0 : i32
    %c0_i32_0 = arith.constant 0 : i32
    %c0_i32_1 = arith.constant 0 : i32
    return %c0_i32, %c0_i32_0 : i32, i32
  }
  func.func @transform_4(%arg0: i32) -> (i32, i32) {
    %c0_i32 = arith.constant 0 : i32
    %c0_i32_0 = arith.constant 0 : i32
    %c0_i32_1 = arith.constant 0 : i32
    return %c0_i32, %c0_i32_0 : i32, i32
  }
  func.func @transform_5(%arg0: i32) -> (i32, i32) {
    %c0_i32 = arith.constant 0 : i32
    %c0_i32_0 = arith.constant 0 : i32
    %c0_i32_1 = arith.constant 0 : i32
    return %c0_i32, %c0_i32_0 : i32, i32
  }
  func.func @transform_6(%arg0: i32) -> (i32, i32) {
    %c0_i32 = arith.constant 0 : i32
    %c0_i32_0 = arith.constant 0 : i32
    %c0_i32_1 = arith.constant 0 : i32
    return %c0_i32, %c0_i32_0 : i32, i32
  }
  func.func @transform_7(%arg0: i32) -> (i32, i32) {
    %c0_i32 = arith.constant 0 : i32
    %c0_i32_0 = arith.constant 0 : i32
    return %arg0, %c0_i32 : i32, i32
  }
}

</mosaic_0001>

<bundles_post_ra>
// kernel: tpu_custom_call.1
= control target key start
LH: loop header
LB: loop body
LE: loop exit
PB: predicated region body
PF: predicated region fallthrough
CT: control target
= control target key end

     0   :  { %12 = vsyncpa [#allocation3], 0  ;;  %s1859_s0 = inlined_call_operand.hbm [shape: f32[8,25], index: 0, kind: input, shape index: {}]   ;;  %s1860_s1 = inlined_call_operand.hbm [shape: bf16[25,384], index: 1, kind: input, shape index: {}]   ;;  %s1861_s2 = inlined_call_operand.vmem [shape: f32[1,384], index: 2, kind: input, shape index: {}]   ;;  %s1862_s3 = inlined_call_operand.hbm [shape: bf16[384,384], index: 3, kind: input, shape index: {}]   ;;  %s1863_s4 = inlined_call_operand.vmem [shape: f32[1,384], index: 4, kind: input, shape index: {}]   ;;  %s1864_s5 = inlined_call_operand.hbm [shape: bf16[384,128], index: 5, kind: input, shape index: {}]   ;;  %s1865_s6 = inlined_call_operand.vmem [shape: f32[1,128], index: 6, kind: input, shape index: {}]   ;;  %s1866_s7 = inlined_call_operand.hbm [shape: f32[8,128], index: 7, kind: output, shape index: {}]  }
   0x1   :  { %13 = vsyncpa [#allocation6], 0 }
   0x2   :  { %14 = vsyncpa [#allocation9], 0 }
   0x3   :  { %15 = vsyncpa [#allocation4], 0  ;;  %s1686_s24 = smov [#allocation5]   ;;  %s1568_s28 = scalar_lea.hbm %s1860_s1, 768 }
   0x4   :  { %s31_s25 = sshll.u32 %s1686_s24, 4  ;;  %p1569_p0 = scmp.ne.s32.totalorder %s1860_s1, %s1568_s28  ;;  %s32_s25 = int_to_ptr.vmem [resolvable:$true] %s31_s25 }
   0x5   :  { %p1572_p1 = scmp.lt.u32.totalorder %s1568_s28, %s1860_s1 }
   0x7   :  { %p1574_p2 = pnand %p1572_p1, %p1569_p0 }
   0x9   :  { %1577 = shalt.err (!%p1574_p2)
}
   0xa   :  { %s1578_s10 = scalar_lea.vmem %s32_s25, 768  ;;  %p1583_p4 = scmp.lt.s32.totalorder %s32_s25, %s32_s25 }
   0xb   :  { %p1579_p3 = scmp.ne.s32.totalorder %s32_s25, %s1578_s10  ;;  %p1584_p5 = scmp.lt.s32.totalorder %s1578_s10, %s1578_s10 }
   0xd   :  { %p1585_p6 = por %p1584_p5, %p1583_p4 }
   0xf   :  { %p1586_p7 = pnand %p1585_p6, %p1579_p3 }
  0x11   :  { %1589 = shalt.err (!%p1586_p7)
}
  0x12   :  { %s1687_s11 = smov 192   ;;  %s1688_s12 = smov 12  }
  0x13   :  { %37 = dma.hbm_to_vmem [thread:$0]  %s1860_s1, 768, %s32_s25, [#allocation6], %s1687_s11, %s1687_s11, %s1688_s12  }
  0x14   :  { %s1689_s15 = smov [#allocation2]   ;;  %s1690_s17 = smov [#allocation7]  }
  0x15   :  { %s22_s16 = sshll.u32 %s1689_s15, 4  ;;  %s45_s18 = sshll.u32 %s1690_s17, 4  ;;  %s23_s16 = int_to_ptr.vmem [resolvable:$true] %s22_s16  ;;  %s46_s18 = int_to_ptr.vmem [resolvable:$true] %s45_s18 }
  0x16   :  { %s1590_s21 = scalar_lea.hbm %s1859_s0, 128 }
  0x17   :  { %p1591_p8 = scmp.ne.s32.totalorder %s1859_s0, %s1590_s21  ;;  %p1594_p9 = scmp.lt.u32.totalorder %s1590_s21, %s1859_s0 }
  0x19   :  { %p1596_p10 = pnand %p1594_p9, %p1591_p8 }
  0x1b   :  { %1599 = shalt.err (!%p1596_p10)
}
  0x1c   :  { %s1600_s1 = scalar_lea.vmem %s23_s16, 128  ;;  %p1605_p12 = scmp.lt.s32.totalorder %s23_s16, %s23_s16 }
  0x1d   :  { %p1601_p11 = scmp.ne.s32.totalorder %s23_s16, %s1600_s1  ;;  %p1606_p13 = scmp.lt.s32.totalorder %s1600_s1, %s1600_s1 }
  0x1f   :  { %p1607_p0 = por %p1606_p13, %p1605_p12 }
  0x21   :  { %p1608_p1 = pnand %p1607_p0, %p1601_p11 }
  0x23   :  { %1611 = shalt.err (!%p1608_p1)
}
  0x24   :  { %25 = dma.hbm_to_vmem [thread:$0]  %s1859_s0, 128, %s23_s16, [#allocation3]  }
  0x25   :  { %s1612_s30 = scalar_lea.hbm %s1862_s3, 9216 }
  0x26   :  { %p1613_p2 = scmp.ne.s32.totalorder %s1862_s3, %s1612_s30  ;;  %p1616_p3 = scmp.lt.u32.totalorder %s1612_s30, %s1862_s3 }
  0x28   :  { %p1618_p4 = pnand %p1616_p3, %p1613_p2 }
  0x2a   :  { %1621 = shalt.err (!%p1618_p4)
}
  0x2b   :  { %s1622_s14 = scalar_lea.vmem %s46_s18, 9216  ;;  %p1627_p6 = scmp.lt.s32.totalorder %s46_s18, %s46_s18 }
  0x2c   :  { %p1623_p5 = scmp.ne.s32.totalorder %s46_s18, %s1622_s14  ;;  %p1628_p7 = scmp.lt.s32.totalorder %s1622_s14, %s1622_s14 }
  0x2e   :  { %p1629_p8 = por %p1628_p7, %p1627_p6 }
  0x30   :  { %p1630_p9 = pnand %p1629_p8, %p1623_p5 }
  0x32   :  { %1633 = shalt.err (!%p1630_p9)
}
  0x33   :  { %51 = dma.hbm_to_vmem [thread:$0]  %s1862_s3, 9216, %s46_s18, [#allocation6], %s1687_s11, %s1687_s11, %s1688_s12  }
  0x34   :  { %s1691_s16 = smov [#allocation8]   ;;  %s1634_s21 = scalar_lea.hbm %s1864_s5, 3072 }
  0x35   :  { %s59_s17 = sshll.u32 %s1691_s16, 4  ;;  %p1635_p10 = scmp.ne.s32.totalorder %s1864_s5, %s1634_s21  ;;  %s60_s17 = int_to_ptr.vmem [resolvable:$true] %s59_s17 }
  0x36   :  { %p1638_p11 = scmp.lt.u32.totalorder %s1634_s21, %s1864_s5 }
  0x38   :  { %p1640_p12 = pnand %p1638_p11, %p1635_p10 }
  0x3a   :  { %1643 = shalt.err (!%p1640_p12)
}
  0x3b   :  { %s1644_s1 = scalar_lea.vmem %s60_s17, 3072  ;;  %p1649_p0 = scmp.lt.s32.totalorder %s60_s17, %s60_s17 }
  0x3c   :  { %p1645_p13 = scmp.ne.s32.totalorder %s60_s17, %s1644_s1  ;;  %p1650_p1 = scmp.lt.s32.totalorder %s1644_s1, %s1644_s1 }
  0x3e   :  { %p1651_p2 = por %p1650_p1, %p1649_p0 }
  0x40   :  { %p1652_p3 = pnand %p1651_p2, %p1645_p13 }
  0x42   :  { %1655 = shalt.err (!%p1652_p3)
}
  0x43   :  { %s1692_s3 = smov 64   ;;  %s1693_s11 = smov 4  }
  0x44   :  { %65 = dma.hbm_to_vmem [thread:$0]  %s1864_s5, 3072, %s60_s17, [#allocation9], %s1692_s3, %s1692_s3, %s1693_s11  }
  0x45   :  { %1678 = dma.done.wait [#allocation3], 128  }
  0x46   :  { %1679 = vsyncadd [#allocation3], 4294967168 }
  0x47   :  { %1680 = dma.done.wait [#allocation6], 9984  }
  0x48   :  { %1681 = vsyncadd [#allocation6], 4294957312 }
  0x49   :  { %1682 = dma.done.wait [#allocation9], 3072  }
  0x4a   :  { %1683 = vsyncadd [#allocation9], 4294964224  ;;  %v1694_v0 = vmov 0   ;;  %vm141_vm0 = vcmask 1043456   ;;  %vm142_vm1 = vcmask 1044480   ;;  %v1695_v1 = vmov 65535  }
  0x4b   :  { %186 = vmatprep.mubr.bf16.mxu1 %v1694_v0  ;;  %v143_v2 = vsel %vm141_vm0, 4294967295, %v1695_v1  ;;  %v1440_v3 = vld [vmem:[#allocation5 + $0x4] ss:$12 sps:$4 sm:$0xff]   ;;  %v1442_v4 = vld [vmem:[#allocation5] ss:$12 sps:$4 sm:$0xff]   ;;  %v81_v8 = vld [vmem:[#allocation2] sm:$0xff] }
  0x4c   :  { %v144_v5 = vsel %vm142_vm1, %v143_v2, 0  ;;  %154 = vmatprep.subr.bf16.mxu1 %v1440_v3  ;;  %v1443_v6 = vld [vmem:[#allocation5 + $0x1c] ss:$12 sps:$4 sm:$0x1f]   ;;  %v82_v12 = vpack.c.bf16 %v81_v8, %v81_v8  ;;  %vm137_vm2 = vcmask 203776   ;;  %v1696_v17 = vmov 0.0  }
  0x4d   :  { %v1445_v7 = vld [vmem:[#allocation5 + $0x18] ss:$12 sps:$4 sm:$0x1f]   ;;  %155 = vmatpush1.bf16.msra.mxu1 %v1442_v4  ;;  %v149_v9 = vand.u32 %v1443_v6, %v144_v5  ;;  %v1446_v11 = vld [vmem:[#allocation5 + $0x8] ss:$12 sps:$4 sm:$0xff]   ;;  %vm1697_vm3 = vmmov 0   ;;  %v93_v2 = vlaneseq }
  0x4e   :  { %v146_v10 = vand.u32 %v1445_v7, %v144_v5  ;;  %v1448_v13 = vld [vmem:[#allocation7 + $0x4] ss:$12 sps:$4 sm:$0xff]   ;;  %v1450_v14 = vld [vmem:[#allocation7] ss:$12 sps:$4 sm:$0xff]   ;;  %v1451_v16 = vld [vmem:[#allocation7 + $0x1c] ss:$12 sps:$4 sm:$0xff]  }
  0x4f   :  { %156 = vmatprep.subr.bf16.mxu1 %v149_v9  ;;  %v1447_v15 = vld [vmem:[#allocation5 + $0x20] ss:$12 sps:$4 sm:$0x1f]   ;;  %738 = vmatprep.subr.bf16.mxu0 %v1448_v13  ;;  %v1453_v18 = vld [vmem:[#allocation7 + $0x18] ss:$12 sps:$4 sm:$0xff]   ;;  %v1801_v3 = vshrl.u32 %v93_v2, 7 }
  0x50   :  { %739 = vmatpush1.bf16.msra.mxu0 %v1450_v14  ;;  %v1454_v19 = vld [vmem:[#allocation7 + $0x34] ss:$12 sps:$4 sm:$0xff]   ;;  %v152_v20 = vand.u32 %v1447_v15, %v144_v5  ;;  %v1456_v21 = vld [vmem:[#allocation7 + $0x30] ss:$12 sps:$4 sm:$0xff]   ;;  %v1457_v22 = vld [vmem:[#allocation7 + $0x4c] ss:$12 sps:$4 sm:$0xff]  }
  0x51   :  { %157 = vmatpush1.bf16.msra.mxu1 %v146_v10  ;;  %740 = vmatprep.subr.bf16.mxu0 %v1451_v16  ;;  %v1459_v23 = vld [vmem:[#allocation7 + $0x48] ss:$12 sps:$4 sm:$0xff]   ;;  %v1460_v25 = vld [vmem:[#allocation7 + $0x64] ss:$12 sps:$4 sm:$0xff]   ;;  %v1462_v27 = vld [vmem:[#allocation7 + $0x60] ss:$12 sps:$4 sm:$0xff]  }
  0x52   :  { %1373 = vmatprep.subr.bf16.mxu1 %v1696_v17  ;;  %v1474_v24 = vld [vmem:[#allocation7 + $0xc8] ss:$12 sps:$4 sm:$0xff]   ;;  %v1479_v29 = vld [vmem:[#allocation7 + $0xe0] ss:$12 sps:$4 sm:$0xff]   ;;  %v1465_v31 = vld [vmem:[#allocation7 + $0x78] ss:$12 sps:$4 sm:$0xff]  }
  0x53   :  { %v1476_v26 = vld [vmem:[#allocation7 + $0x8] ss:$12 sps:$4 sm:$0xff]   ;;  %v1481_v30 = vld [vmem:[#allocation7 + $0x20] ss:$12 sps:$4 sm:$0xff]   ;;  %v1484_v32 = vld [vmem:[#allocation7 + $0xf8] ss:$12 sps:$4 sm:$0xff]  }
  0x54   :  { %1209 = vmatmul.mubr.msk.bf16.vlgmr.msra.gmra.mrb[0].mxu1 %vm137_vm2, %v82_v12  ;;  %741 = vmatpush1.bf16.msra.mxu0 %v1453_v18  ;;  %v1463_v28 = vld [vmem:[#allocation7 + $0x7c] ss:$12 sps:$4 sm:$0xff]   ;;  %v1486_v33 = vld [vmem:[#allocation7 + $0x38] ss:$12 sps:$4 sm:$0xff]   ;;  %v1466_v34 = vld [vmem:[#allocation7 + $0x94] ss:$12 sps:$4 sm:$0xff]  }
  0x55   :  { %1374 = vmatpush3.bf16.msra.mxu1 %v1446_v11  ;;  %1377 = vmatprep.mubr.msk.bf16.mxu1 %vm1697_vm3, %v1696_v17  ;;  %v1489_v35 = vld [vmem:[#allocation7 + $0x110] ss:$12 sps:$4 sm:$0xff]   ;;  %v1469_v38 = vld [vmem:[#allocation7 + $0xac] ss:$12 sps:$4 sm:$0xff]   ;;  %v1494_v39 = vld [vmem:[#allocation7 + $0x128] ss:$12 sps:$4 sm:$0xff]  }
  0x56   :  { %1375 = vmatprep.subr.bf16.mxu1 %v1696_v17  ;;  %742 = vmatprep.subr.bf16.mxu0 %v1454_v19  ;;  %v1468_v36 = vld [vmem:[#allocation7 + $0x90] ss:$12 sps:$4 sm:$0xff]   ;;  %v1471_v40 = vld [vmem:[#allocation7 + $0xa8] ss:$12 sps:$4 sm:$0xff]   ;;  %v1499_v43 = vld [vmem:[#allocation7 + $0x140] ss:$12 sps:$4 sm:$0xff]  }
  0x57   :  { %v1491_v37 = vld [vmem:[#allocation7 + $0x50] ss:$12 sps:$4 sm:$0xff]   ;;  %v1496_v41 = vld [vmem:[#allocation7 + $0x68] ss:$12 sps:$4 sm:$0xff]   ;;  %v1475_v44 = vld [vmem:[#allocation7 + $0xc0] ss:$12 sps:$4 sm:$0xff]  }
  0x58   :  { %743 = vmatpush1.bf16.msra.mxu0 %v1456_v21  ;;  %v1472_v42 = vld [vmem:[#allocation7 + $0xc4] ss:$12 sps:$4 sm:$0xff]   ;;  %v1477_v45 = vld [vmem:[#allocation7 + $0xdc] ss:$12 sps:$4 sm:$0xff]   ;;  %v1501_v46 = vld [vmem:[#allocation7 + $0x80] ss:$12 sps:$4 sm:$0xff]  }
  0x59   :  { %1376 = vmatpush3.bf16.msra.mxu1 %v152_v20  ;;  %744 = vmatprep.subr.bf16.mxu0 %v1457_v22  ;;  %v1480_v47 = vld [vmem:[#allocation7 + $0xd8] ss:$12 sps:$4 sm:$0xff]   ;;  %v1482_v48 = vld [vmem:[#allocation7 + $0xf4] ss:$12 sps:$4 sm:$0xff]   ;;  %v1485_v49 = vld [vmem:[#allocation7 + $0xf0] ss:$12 sps:$4 sm:$0xff]  }
  0x5a   :  { %1311 = vmatprep.subr.bf16.mxu1 %v1474_v24  ;;  %v1487_v50 = vld [vmem:[#allocation7 + $0x10c] ss:$12 sps:$4 sm:$0xff]   ;;  %v1490_v51 = vld [vmem:[#allocation7 + $0x108] ss:$12 sps:$4 sm:$0xff]   ;;  %v1492_v52 = vld [vmem:[#allocation7 + $0x124] ss:$12 sps:$4 sm:$0xff]  }
  0x5b   :  { %v1495_v53 = vld [vmem:[#allocation7 + $0x120] ss:$12 sps:$4 sm:$0xff]   ;;  %v1497_v54 = vld [vmem:[#allocation7 + $0x13c] ss:$12 sps:$4 sm:$0xff]   ;;  %v1500_v55 = vld [vmem:[#allocation7 + $0x138] ss:$12 sps:$4 sm:$0xff]  }
  0x5c   :  { %1378 = vmatmul.mubr.msk.bf16.vlgmr.msra.gmra.mrb[4].mxu1 %vm137_vm2, %v82_v12  ;;  %745 = vmatpush1.bf16.msra.mxu0 %v1459_v23  ;;  %v1502_v56 = vld [vmem:[#allocation7 + $0x154] ss:$12 sps:$4 sm:$0xff]   ;;  %v1504_v57 = vld [vmem:[#allocation7 + $0x158] ss:$12 sps:$4 sm:$0xff]   ;;  %v1505_v58 = vld [vmem:[#allocation7 + $0x150] ss:$12 sps:$4 sm:$0xff]  }
  0x5d   :  { %1312 = vmatpush3.bf16.msra.mxu1 %v1476_v26  ;;  %746 = vmatprep.subr.bf16.mxu0 %v1460_v25  ;;  %v1506_v59 = vld [vmem:[#allocation7 + $0x98] ss:$12 sps:$4 sm:$0xff]   ;;  %v1509_v61 = vld [vmem:[#allocation7 + $0x170] ss:$12 sps:$4 sm:$0xff]   ;;  %v1510_v62 = vld [vmem:[#allocation7 + $0x168] ss:$12 sps:$4 sm:$0xff]  }
  0x5e   :  { %1313 = vmatprep.subr.bf16.mxu1 %v1479_v29  ;;  %v1507_v60 = vld [vmem:[#allocation7 + $0x16c] ss:$12 sps:$4 sm:$0xff]   ;;  %v1511_v63 = vld [vmem:[#allocation7 + $0xb0] ss:$12 sps:$4 sm:$0xff]   ;;  %v95_v4 = vsub.s32 0, %v1801_v3  ;;  %v99_v6 = vsub.s32 1, %v1801_v3 }
  0x5f   :  { %v1514_v1 = vld [vmem:[#allocation7 + $0x184] ss:$12 sps:$4 sm:$0xff]   ;;  %v91_v5 = vld [vmem:[%s1861_s2] sm:$0x7]  ;;  %v1512_v19 = vld [vmem:[#allocation7 + $0x180] ss:$12 sps:$4 sm:$0xff]  }
  0x60   :  { %747 = vmatpush1.bf16.msra.mxu0 %v1462_v27  ;;  %v96_v7 = vrot.slane %v91_v5, %v95_v4  ;;  %v100_v8 = vrot.slane %v91_v5, %v99_v6  ;;  %v1515_v20 = vld [vmem:[#allocation7 + $0x188] ss:$12 sps:$4 sm:$0xff]   ;;  %v1516_v25 = vld [vmem:[#allocation7 + $0x198] ss:$12 sps:$4 sm:$0xff]   ;;  %v1519_v26 = vld [vmem:[#allocation7 + $0x1a0] ss:$12 sps:$4 sm:$0xff]  }
  0x61   :  { %1314 = vmatpush3.bf16.msra.mxu1 %v1481_v30  ;;  %748 = vmatprep.subr.bf16.mxu0 %v1463_v28  ;;  %v1518_v22 = vld [vmem:[#allocation7 + $0x19c] ss:$12 sps:$4 sm:$0xff]   ;;  %v1522_v28 = vld [vmem:[#allocation7 + $0x1b4] ss:$12 sps:$4 sm:$0xff]   ;;  %s1698_s29 = smov [#allocation10]  }
  0x62   :  { %1315 = vmatprep.subr.bf16.mxu1 %v1484_v32  ;;  %v1520_v30 = vld [vmem:[#allocation7 + $0x1b0] ss:$12 sps:$4 sm:$0xff]   ;;  %v1526_v32 = vld [vmem:[#allocation7 + $0x1cc] ss:$12 sps:$4 sm:$0xff]   ;;  %v1558_v2 = vld [vmem:[#allocation8 + $0x20] sm:$0xff]   ;;  %s1192_s30 = sshll.u32 %s1698_s29, 4  ;;  %s1193_s30 = int_to_ptr.vmem [resolvable:$true] %s1192_s30 }
  0x63   :  { %s1656_s8 = scalar_lea.vmem %s1193_s30, 128  ;;  %p1661_p5 = scmp.lt.s32.totalorder %s1193_s30, %s1193_s30 }
  0x64   :  { %749 = vmatpush1.bf16.msra.mxu0 %v1465_v31  ;;  %v1523_v31 = vld [vmem:[#allocation7 + $0x1b8] ss:$12 sps:$4 sm:$0xff]   ;;  %p1657_p4 = scmp.ne.s32.totalorder %s1193_s30, %s1656_s8  ;;  %p1662_p6 = scmp.lt.s32.totalorder %s1656_s8, %s1656_s8 }
  0x65   :  { %1316 = vmatpush3.bf16.msra.mxu1 %v1486_v33  ;;  %750 = vmatprep.subr.bf16.mxu0 %v1466_v34  ;;  %v1524_v33 = vld [vmem:[#allocation7 + $0x1c8] ss:$12 sps:$4 sm:$0xff]   ;;  %v1527_v34 = vld [vmem:[#allocation7 + $0x1d0] ss:$12 sps:$4 sm:$0xff]  }
  0x66   :  { %1317 = vmatprep.subr.bf16.mxu1 %v1489_v35  ;;  %v1530_v35 = vld [vmem:[#allocation7 + $0x1e4] ss:$12 sps:$4 sm:$0xff]   ;;  %p1663_p7 = por %p1662_p6, %p1661_p5 }
  0x68   :  { %751 = vmatpush1.bf16.msra.mxu0 %v1468_v36  ;;  %v1528_v36 = vld [vmem:[#allocation7 + $0x1e0] ss:$12 sps:$4 sm:$0xff]   ;;  %p1664_p8 = pnand %p1663_p7, %p1657_p4 }
  0x69   :  { %1318 = vmatpush3.bf16.msra.mxu1 %v1491_v37  ;;  %752 = vmatprep.subr.bf16.mxu0 %v1469_v38  ;;  %v1531_v37 = vld [vmem:[#allocation7 + $0x1e8] ss:$12 sps:$4 sm:$0xff]  }
  0x6a   :  { %1319 = vmatprep.subr.bf16.mxu1 %v1494_v39  ;;  %v1534_v38 = vld [vmem:[#allocation7 + $0x1fc] ss:$12 sps:$4 sm:$0xff]  }
  0x6c   :  { %753 = vmatpush1.bf16.msra.mxu0 %v1471_v40  ;;  %v1532_v40 = vld [vmem:[#allocation7 + $0x1f8] ss:$12 sps:$4 sm:$0xff]  }
  0x6d   :  { %1320 = vmatpush3.bf16.msra.mxu1 %v1496_v41  ;;  %754 = vmatprep.subr.bf16.mxu0 %v1472_v42  ;;  %v1535_v41 = vld [vmem:[#allocation7 + $0x200] ss:$12 sps:$4 sm:$0xff]  }
  0x6e   :  { %1321 = vmatprep.subr.bf16.mxu1 %v1499_v43  ;;  %v1538_v42 = vld [vmem:[#allocation7 + $0x214] ss:$12 sps:$4 sm:$0xff]  }
  0x70   :  { %755 = vmatpush1.bf16.msra.mxu0 %v1475_v44  ;;  %v1536_v44 = vld [vmem:[#allocation7 + $0x210] ss:$12 sps:$4 sm:$0xff]  }
  0x71   :  { %1322 = vmatpush3.bf16.msra.mxu1 %v1501_v46  ;;  %756 = vmatprep.subr.bf16.mxu0 %v1477_v45  ;;  %v1539_v45 = vld [vmem:[#allocation7 + $0x218] ss:$12 sps:$4 sm:$0xff]  }
  0x72   :  { %1323 = vmatprep.subr.bf16.mxu1 %v1504_v57  ;;  %v1542_v46 = vld [vmem:[#allocation7 + $0x22c] ss:$12 sps:$4 sm:$0xff]   ;;  %v1551_v57 = vld [vmem:[#allocation8 + $0x50] sm:$0xff]  }
  0x74   :  { %757 = vmatpush1.bf16.msra.mxu0 %v1480_v47 }
  0x75   :  { %758 = vmatprep.subr.bf16.mxu0 %v1482_v48  ;;  %1324 = vmatpush3.bf16.msra.mxu1 %v1506_v59  ;;  %v1540_v48 = vld [vmem:[#allocation7 + $0x228] ss:$12 sps:$4 sm:$0xff]  }
  0x76   :  { %1325 = vmatprep.subr.bf16.mxu1 %v1509_v61  ;;  %v1552_v59 = vld [vmem:[#allocation8 + $0x10] sm:$0xff]   ;;  %v1553_v61 = vld [vmem:[#allocation8 + $0x98] sm:$0xff]  }
  0x78   :  { %759 = vmatpush1.bf16.msra.mxu0 %v1485_v49  ;;  %v1543_v49 = vld [vmem:[#allocation7 + $0x230] ss:$12 sps:$4 sm:$0xff]  }
  0x79   :  { %760 = vmatprep.subr.bf16.mxu0 %v1487_v50  ;;  %1326 = vmatpush3.bf16.msra.mxu1 %v1511_v63  ;;  %v1557_v63 = vld [vmem:[#allocation8 + $0x60] sm:$0xff]  }
  0x7a   :  { %1381 = vmatprep.subr.bf16.mxu1 %v1696_v17 }
  0x7c   :  { %761 = vmatpush1.bf16.msra.mxu0 %v1490_v51  ;;  %v1544_v51 = vld [vmem:[#allocation8 + $0x80] sm:$0xff]  }
  0x7d   :  { %762 = vmatprep.subr.bf16.mxu0 %v1492_v52  ;;  %v1545_v52 = vld [vmem:[#allocation8 + $0x40] sm:$0xff]  }
  0x80   :  { %763 = vmatpush1.bf16.msra.mxu0 %v1495_v53  ;;  %v1546_v53 = vld [vmem:[#allocation8] sm:$0xff]  }
  0x81   :  { %764 = vmatprep.subr.bf16.mxu0 %v1497_v54  ;;  %v1548_v54 = vld [vmem:[#allocation8 + $0x48] sm:$0xff]  }
  0x84   :  { %765 = vmatpush1.bf16.msra.mxu0 %v1500_v55  ;;  %v1547_v55 = vld [vmem:[#allocation8 + $0x88] sm:$0xff]  }
  0x85   :  { %766 = vmatprep.subr.bf16.mxu0 %v1502_v56  ;;  %v1549_v56 = vld [vmem:[#allocation8 + $0x8] sm:$0xff]  }
  0x88   :  { %767 = vmatpush1.bf16.msra.mxu0 %v1505_v58  ;;  %v1550_v58 = vld [vmem:[#allocation8 + $0x90] sm:$0xff]  }
  0x89   :  { %768 = vmatprep.subr.bf16.mxu0 %v1507_v60  ;;  %v1554_v60 = vld [vmem:[#allocation8 + $0x58] sm:$0xff]  }
  0x8c   :  { %769 = vmatpush1.bf16.msra.mxu0 %v1510_v62  ;;  %v1555_v62 = vld [vmem:[#allocation8 + $0x18] sm:$0xff]  }
  0x8d   :  { %779 = vmatprep.subr.bf16.mxu0 %v1514_v1  ;;  %v1556_v1 = vld [vmem:[#allocation8 + $0xa0] sm:$0xff]  }
 0x127   :  { %v188_v9 = vpop.f32.mrb[0].mxu1 }
 0x128   :  { %v189_v10 = vadd.f32 %v188_v9, %v96_v7  ;;  %v190_v11 = vpop.f32.mrb[1].mxu1  ;;  %v1559_v7 = vld [vmem:[#allocation8 + $0xa8] sm:$0xff]   ;;  %v1562_v9 = vld [vmem:[#allocation8 + $0xb0] sm:$0xff]  }
 0x129   :  { %v191_v12 = vadd.f32 %v190_v11, %v100_v8  ;;  %v192_v13 = vpop.f32.mrb[2].mxu1  ;;  %v1561_v8 = vld [vmem:[#allocation8 + $0x28] sm:$0xff]   ;;  %v1564_v11 = vld [vmem:[#allocation8 + $0x30] sm:$0xff]  }
 0x12a   :  { %v235_v14 = vmax.f32 %v189_v10, 0.0  ;;  %v193_v15 = vpop.f32.mrb[3].mxu1  ;;  %v1563_v10 = vld [vmem:[#allocation8 + $0x70] sm:$0xff]   ;;  %v1566_v13 = vld [vmem:[#allocation8 + $0x78] sm:$0xff]  }
 0x12b   :  { %v236_v16 = vmax.f32 %v191_v12, 0.0  ;;  %v1565_v12 = vld [vmem:[#allocation8 + $0xb8] sm:$0xff]  }
 0x12c   :  { %v238_v21 = vpack.c.bf16 %v235_v14, %v235_v14  ;;  %v1567_v14 = vld [vmem:[#allocation8 + $0x38] sm:$0xff]  }
 0x12d   :  { %v239_v18 = vpack.c.bf16 %v236_v16, %v236_v16 }
 0x12f   :  { %770 = vmatprep.mubr.bf16.mxu0 %v239_v18  ;;  %852 = vmatprep.mubr.bf16.mxu1 %v239_v18  ;;  %v229_v23 = vpop.f32.mrb[4].mxu1 }
 0x130   :  { %771 = vmatmul.mubr.bf16.vlgmr.msra.gmra.mrb[0].mxu0 %v238_v21  ;;  %853 = vmatmul.mubr.bf16.vlgmr.msra.gmra.mrb[8].mxu1 %v238_v21  ;;  %v1379_v24 = vpop.f32.mrb[5].mxu1  ;;  %v337_v21 = vld [vmem:[%s1863_s4] sm:$0x7] }
 0x131   :  { %780 = vmatpush1.bf16.msra.mxu0 %v1512_v19  ;;  %1382 = vmatpush3.bf16.msra.mxu1 %v1515_v20  ;;  %v232_v27 = vpop.f32.mrb[6].mxu1 }
 0x132   :  { %781 = vmatprep.subr.bf16.mxu0 %v1518_v22  ;;  %1383 = vmatprep.subr.bf16.mxu1 %v1696_v17  ;;  %v1380_v29 = vpop.f32.mrb[7].mxu1 }
 0x133   :  { %811 = vmatprep.mubr.bf16.mxu0 %v1694_v0  ;;  %1397 = vmatprep.mubr.msk.bf16.mxu1 %vm1697_vm3, %v1696_v17  ;;  %v103_v0 = vsub.s32 2, %v1801_v3 }
 0x135   :  { %782 = vmatpush1.bf16.msra.mxu0 %v1516_v25  ;;  %1384 = vmatpush3.bf16.msra.mxu1 %v1519_v26  ;;  %v104_v39 = vrot.slane %v91_v5, %v103_v0  ;;  %v1560_v5 = vld [vmem:[#allocation8 + $0x68] sm:$0xff]   ;;  %v350_v22 = vrot.slane %v337_v21, %v103_v0 }
 0x136   :  { %783 = vmatprep.subr.bf16.mxu0 %v1522_v28  ;;  %1385 = vmatprep.subr.bf16.mxu1 %v1696_v17 }
 0x137   :  { %v230_v43 = vadd.f32 %v229_v23, %v104_v39  ;;  %v346_v23 = vrot.slane %v337_v21, %v99_v6 }
 0x139   :  { %784 = vmatpush1.bf16.msra.mxu0 %v1520_v30  ;;  %1386 = vmatpush3.bf16.msra.mxu1 %v1523_v31  ;;  %v237_v47 = vmax.f32 %v230_v43, 0.0 }
 0x13a   :  { %785 = vmatprep.subr.bf16.mxu0 %v1526_v32  ;;  %1387 = vmatprep.subr.bf16.mxu1 %v1696_v17 }
 0x13b   :  { %v240_v50 = vpack.c.bf16 %v237_v47, %v237_v47 }
 0x13d   :  { %786 = vmatpush1.bf16.msra.mxu0 %v1524_v33  ;;  %1388 = vmatpush3.bf16.msra.mxu1 %v1527_v34 }
 0x13e   :  { %787 = vmatprep.subr.bf16.mxu0 %v1530_v35  ;;  %1389 = vmatprep.subr.bf16.mxu1 %v1696_v17 }
 0x141   :  { %788 = vmatpush1.bf16.msra.mxu0 %v1528_v36  ;;  %1390 = vmatpush3.bf16.msra.mxu1 %v1531_v37 }
 0x142   :  { %789 = vmatprep.subr.bf16.mxu0 %v1534_v38  ;;  %1391 = vmatprep.subr.bf16.mxu1 %v1696_v17 }
 0x145   :  { %790 = vmatpush1.bf16.msra.mxu0 %v1532_v40  ;;  %1392 = vmatpush3.bf16.msra.mxu1 %v1535_v41 }
 0x146   :  { %791 = vmatprep.subr.bf16.mxu0 %v1538_v42  ;;  %1393 = vmatprep.subr.bf16.mxu1 %v1696_v17  ;;  %v1283_v42 = vld [vmem:[%s1865_s6] ss:$0 sm:$0xff] }
 0x149   :  { %792 = vmatpush1.bf16.msra.mxu0 %v1536_v44  ;;  %1394 = vmatpush3.bf16.msra.mxu1 %v1539_v45 }
 0x14a   :  { %793 = vmatprep.subr.bf16.mxu0 %v1542_v46  ;;  %1395 = vmatprep.subr.bf16.mxu1 %v1696_v17 }
 0x14d   :  { %794 = vmatpush1.bf16.msra.mxu0 %v1540_v48  ;;  %1396 = vmatpush3.bf16.msra.mxu1 %v1543_v49 }
 0x14e   :  { %1401 = vmatprep.subr.bf16.mxu0 %v1696_v17  ;;  %1342 = vmatprep.subr.bf16.mxu1 %v1545_v52 }
 0x150   :  { %812 = vmatmul.mubr.bf16.vlgmr.msra.gmra.mrb[0].mxu0 %v240_v50  ;;  %1398 = vmatmul.mubr.bf16.vlgmr.msra.gmra.mrb[12].mxu1 %v240_v50 }
 0x151   :  { %1417 = vmatprep.mubr.msk.bf16.mxu0 %vm1697_vm3, %v1696_v17  ;;  %1402 = vmatpush3.bf16.msra.mxu0 %v1544_v51 }
 0x152   :  { %1343 = vmatpush3.bf16.msra.mxu1 %v1546_v53  ;;  %1403 = vmatprep.subr.bf16.mxu0 %v1696_v17 }
 0x153   :  { %1344 = vmatprep.subr.bf16.mxu1 %v1548_v54 }
 0x155   :  { %1404 = vmatpush3.bf16.msra.mxu0 %v1547_v55 }
 0x156   :  { %1345 = vmatpush3.bf16.msra.mxu1 %v1549_v56  ;;  %1405 = vmatprep.subr.bf16.mxu0 %v1696_v17 }
 0x157   :  { %1346 = vmatprep.subr.bf16.mxu1 %v1551_v57 }
 0x159   :  { %1406 = vmatpush3.bf16.msra.mxu0 %v1550_v58 }
 0x15a   :  { %1347 = vmatpush3.bf16.msra.mxu1 %v1552_v59  ;;  %1407 = vmatprep.subr.bf16.mxu0 %v1696_v17 }
 0x15b   :  { %1348 = vmatprep.subr.bf16.mxu1 %v1554_v60 }
 0x15d   :  { %1408 = vmatpush3.bf16.msra.mxu0 %v1553_v61 }
 0x15e   :  { %1349 = vmatpush3.bf16.msra.mxu1 %v1555_v62  ;;  %1409 = vmatprep.subr.bf16.mxu0 %v1696_v17 }
 0x15f   :  { %1350 = vmatprep.subr.bf16.mxu1 %v1557_v63 }
 0x161   :  { %1410 = vmatpush3.bf16.msra.mxu0 %v1556_v1 }
 0x162   :  { %1351 = vmatpush3.bf16.msra.mxu1 %v1558_v2  ;;  %1411 = vmatprep.subr.bf16.mxu0 %v1696_v17 }
 0x163   :  { %1352 = vmatprep.subr.bf16.mxu1 %v1560_v5 }
 0x165   :  { %1412 = vmatpush3.bf16.msra.mxu0 %v1559_v7 }
 0x166   :  { %1353 = vmatpush3.bf16.msra.mxu1 %v1561_v8  ;;  %1413 = vmatprep.subr.bf16.mxu0 %v1696_v17 }
 0x167   :  { %1354 = vmatprep.subr.bf16.mxu1 %v1563_v10 }
 0x169   :  { %1414 = vmatpush3.bf16.msra.mxu0 %v1562_v9 }
 0x16a   :  { %1415 = vmatprep.subr.bf16.mxu0 %v1696_v17  ;;  %1355 = vmatpush3.bf16.msra.mxu1 %v1564_v11  ;;  %v342_v17 = vrot.slane %v337_v21, %v95_v4 }
 0x16b   :  { %1356 = vmatprep.subr.bf16.mxu1 %v1566_v13 }
 0x16d   :  { %1416 = vmatpush3.bf16.msra.mxu0 %v1565_v12 }
 0x16e   :  { %1357 = vmatpush3.bf16.msra.mxu1 %v1567_v14 }
 0x203   :  { %v1327_v15 = vpop.f32.mrb[8].mxu1 }
 0x204   :  { %v1328_v16 = vpop.f32.mrb[9].mxu1 }
 0x205   :  { %v1329_v18 = vadd.f32 %v1328_v16, %v1327_v15  ;;  %v1330_v19 = vpop.f32.mrb[10].mxu1 }
 0x206   :  { %v1331_v20 = vpop.f32.mrb[11].mxu1 }
 0x207   :  { %v855_v24 = vadd.f32 %v1329_v18, %v350_v22 }
 0x223   :  { %v813_v25 = vpop.f32.mrb[0].mxu0  ;;  %v894_v26 = vpop.f32.mrb[12].mxu1 }
 0x224   :  { %v1421_v27 = vadd.f32 %v813_v25, %v342_v17  ;;  %v895_v28 = vadd.f32 %v894_v26, %v855_v24  ;;  %v815_v29 = vpop.f32.mrb[1].mxu0  ;;  %v1399_v30 = vpop.f32.mrb[13].mxu1 }
 0x225   :  { %v1422_v31 = vadd.f32 %v815_v29, %v346_v23  ;;  %v817_v32 = vpop.f32.mrb[2].mxu0  ;;  %v897_v33 = vpop.f32.mrb[14].mxu1 }
 0x226   :  { %v900_v34 = vmax.f32 %v1421_v27, 0.0  ;;  %v902_v35 = vmax.f32 %v895_v28, 0.0  ;;  %v818_v36 = vpop.f32.mrb[3].mxu0  ;;  %v1400_v0 = vpop.f32.mrb[15].mxu1 }
 0x227   :  { %v901_v37 = vmax.f32 %v1422_v31, 0.0 }
 0x228   :  { %v905_v38 = vpack.c.bf16 %v902_v35, %v902_v35  ;;  %v903_v39 = vpack.c.bf16 %v900_v34, %v900_v34 }
 0x229   :  { %v904_v4 = vpack.c.bf16 %v901_v37, %v901_v37 }
 0x22a   :  { %1418 = vmatmul.mubr.bf16.vlgmr.msra.gmra.mrb[4].mxu0 %v905_v38 }
 0x22b   :  { %1137 = vmatprep.mubr.bf16.mxu1 %v904_v4 }
 0x22c   :  { %1138 = vmatmul.mubr.bf16.vlgmr.msra.gmra.mrb[16].mxu1 %v903_v39 }
 0x2fd   :  { %v1179_v3 = vpop.f32.mrb[4].mxu0 }
 0x2fe   :  { %v1419_v6 = vpop.f32.mrb[5].mxu0 }
 0x2ff   :  { %v1358_v40 = vpop.f32.mrb[16].mxu1  ;;  %v1182_v41 = vpop.f32.mrb[6].mxu0 }
 0x300   :  { %v1359_v43 = vpop.f32.mrb[17].mxu1  ;;  %v1420_v44 = vpop.f32.mrb[7].mxu0 }
 0x301   :  { %v1360_v45 = vadd.f32 %v1359_v43, %v1358_v40  ;;  %v1361_v46 = vpop.f32.mrb[18].mxu1 }
 0x302   :  { %v1362_v47 = vpop.f32.mrb[19].mxu1 }
 0x303   :  { %v1140_v48 = vadd.f32 %v1360_v45, %v1283_v42 }
 0x305   :  { %v1180_v49 = vadd.f32 %v1179_v3, %v1140_v48 }
 0x307   :  { %1185 = vst [vmem:[#allocation10] sm:$0xff] %v1180_v49 }
 0x308   :  { %1667 = shalt.err (!%p1664_p8)
}
 0x309   :  { %s1668_s10 = scalar_lea.hbm %s1866_s7, 128 }
 0x30a   :  { %p1669_p9 = scmp.ne.s32.totalorder %s1866_s7, %s1668_s10  ;;  %p1672_p10 = scmp.lt.u32.totalorder %s1668_s10, %s1866_s7 }
 0x30c   :  { %p1674_p11 = pnand %p1672_p10, %p1669_p9 }
 0x30e   :  { %1677 = shalt.err (!%p1674_p11)
}
 0x30f   :  { %1195 = dma.vmem_to_hbm [thread:$0]  %s1193_s30, 128, %s1866_s7, [#allocation4]  }
 0x310   :  { %1684 = dma.done.wait [#allocation4], 128  }
 0x311   :  { %1685 = vsyncadd [#allocation4], 4294967168 }
 0x312   :  { %1199 = vsyncpa [#allocation3], 1 }
 0x313   :  { %1200 = vsyncpa [#allocation6], 1 }
 0x314   :  { %1201 = vsyncpa [#allocation9], 1 }
 0x315   :  { %1202 = vsyncpa [#allocation4], 1 }

</bundles_post_ra>
